<compile_context>
chip_gen: v7x
topology: tpu7x:2x2x1
jax: 0.10.0
libtpu: 0.0.40
codegen_flags: <defaults>
</compile_context>

<pallas_src>
import functools

import jax
import jax.numpy as jnp
import numpy as np
from jax import lax
from jax.experimental import pallas as pl
from jax.experimental.pallas import tpu as pltpu


def _round_up(x, m):
    return ((x + m - 1) // m) * m


def self_attention_kernel(x_ref, wqkv_ref, o_ref, *, d_in, d_out, d_pad):
    # x_ref:    (Bt, S, d_in)        fp32
    # wqkv_ref: (d_in, 3*d_pad)      [Wq | Wk | Wv], zero-padded feature columns
    # o_ref:    (Bt, S, d_pad)       lane-dense output (real columns: [:d_out])
    bt, s, _ = x_ref.shape
    scale = jnp.float32(1.0) / jnp.sqrt(jnp.float32(d_in))

    # --- fused QKV projection: one wide MXU matmul over the whole block -----
    x2 = x_ref[...].reshape(bt * s, d_in)
    qkv = jnp.dot(x2, wqkv_ref[...], preferred_element_type=jnp.float32)
    qkv = qkv.reshape(bt, s, 3 * d_pad)

    # 128-aligned last-dim slices -> no cross-tile copies.
    q = qkv[:, :, 0 * d_pad:1 * d_pad]   # (Bt, S, d_pad)
    k = qkv[:, :, 1 * d_pad:2 * d_pad]
    v = qkv[:, :, 2 * d_pad:3 * d_pad]

    # scores[b] = q[b]^T @ k[b] : batched contraction over the sequence dim
    # (no explicit transpose / XLU work).
    scores = jnp.einsum('bsd,bse->bde', q, k,
                        preferred_element_type=jnp.float32) * scale   # (Bt, d_pad, d_pad)

    # Mask the zero-padded feature columns so the softmax only sees real cols.
    if d_pad != d_out:
        col = lax.broadcasted_iota(jnp.int32, (1, d_pad, d_pad), 2)
        scores = jnp.where(col < d_out, scores, jnp.float32(-1e30))

    # Numerically stable softmax over the last axis (f32, matches torch).
    m = jnp.max(scores, axis=-1, keepdims=True)
    e = jnp.exp(scores - m)
    denom = jnp.sum(e, axis=-1, keepdims=True)
    attn = e * pl.reciprocal(denom, approx=False)                    # exact 1/x

    # context[b] = v[b] @ attn[b]  -> (Bt, S, d_pad)
    ctx = jnp.einsum('bsd,bde->bse', v, attn,
                     preferred_element_type=jnp.float32)
    o_ref[...] = ctx.astype(o_ref.dtype)


def _pick_block_b(B, S, d_in, d_pad, budget_bytes=40 * 1024 * 1024, max_bt=8):
    """Largest batch tile (divisor of B) that fits the VMEM budget while keeping
    >= 2 grid steps (megacore / v7x) whenever B > 1."""
    best = 1
    for bt in range(1, min(B, max_bt) + 1):
        if B % bt:
            continue
        if B > 1 and (B // bt) < 2:
            continue
        per_step = (4 * bt * (2 * S * d_in + 5 * S * d_pad + 2 * d_pad * d_pad)
                    + 2 * 4 * d_in * 3 * d_pad)
        if per_step <= budget_bytes:
            best = bt
    return best


def self_attention(x, w_query, w_key, w_value, *, block_b=None):
    B, S, d_in = x.shape
    d_out = w_query.shape[1]
    d_pad = _round_up(d_out, 128)   # lane-dense output / matmul N dimension

    # Fuse + zero-pad the projection weights host-side: (d_in, 3*d_pad).
    def _pad(w):
        if d_pad == d_out:
            return w
        return jnp.pad(w, ((0, 0), (0, d_pad - d_out)))

    wqkv = jnp.concatenate([_pad(w_query), _pad(w_key), _pad(w_value)], axis=1)

    bt = _pick_block_b(B, S, d_in, d_pad) if block_b is None else block_b
    assert B % bt == 0, "batch tile must divide batch"
    grid = (B // bt,)

    kernel = functools.partial(self_attention_kernel,
                               d_in=d_in, d_out=d_out, d_pad=d_pad)

    out_padded = pl.pallas_call(
        kernel,
        out_shape=jax.ShapeDtypeStruct((B, S, d_pad), x.dtype),
        grid=grid,
        in_specs=[
            pl.BlockSpec((bt, S, d_in), lambda b: (b, 0, 0)),
            pl.BlockSpec((d_in, 3 * d_pad), lambda b: (0, 0)),
        ],
        out_specs=pl.BlockSpec((bt, S, d_pad), lambda b: (b, 0, 0)),
        compiler_params=pltpu.CompilerParams(
            dimension_semantics=("parallel",),
            vmem_limit_bytes=48 * 1024 * 1024,   # safe on v5e/v6e/v7x
        ),
    )(x, wqkv)

    # Drop the zero-padded feature columns.
    return out_padded[:, :, :d_out]


def self_attention_ref(x, wq, wk, wv):
    d_in = x.shape[-1]
    q = x @ wq
    k = x @ wk
    v = x @ wv
    scores = jnp.swapaxes(q, -2, -1) @ k
    w = jax.nn.softmax(scores / jnp.sqrt(jnp.float32(d_in)), axis=-1)
    return v @ w


if __name__ == "__main__":
    B, S, d_in, d_out = 2, 8, 16, 32

    key = jax.random.PRNGKey(0)
    kx, kq, kk, kv = jax.random.split(key, 4)

    # Deterministic parameter init matching torch.randn(d_in, d_out) / sqrt(d_out)
    x = jax.random.normal(kx, (B, S, d_in), dtype=jnp.float32)
    w_query = jax.random.normal(kq, (d_in, d_out), dtype=jnp.float32) * (1.0 / np.sqrt(d_out))
    w_key = jax.random.normal(kk, (d_in, d_out), dtype=jnp.float32) * (1.0 / np.sqrt(d_out))
    w_value = jax.random.normal(kv, (d_in, d_out), dtype=jnp.float32) * (1.0 / np.sqrt(d_out))

    out = jax.block_until_ready(self_attention(x, w_query, w_key, w_value))
    ref = jax.block_until_ready(self_attention_ref(x, w_query, w_key, w_value))
    np.testing.assert_allclose(np.asarray(out), np.asarray(ref), rtol=1e-5, atol=1e-5)

    print("KERNEL_OK")
</pallas_src>

<mosaic_0001>
module attributes {stable_mosaic.version = 11 : i64} {
  func.func @self_attention_kernel(%arg0: i32, %arg1: memref<1x8x16xf32, #tpu.memory_space<vmem>>, %arg2: memref<16x384xf32, #tpu.memory_space<vmem>>, %arg3: memref<1x8x128xf32, #tpu.memory_space<vmem>>) attributes {dimension_semantics = [#tpu.dimension_semantics<parallel>], iteration_bounds = array<i64: 2>, scalar_prefetch = 0 : i64, scratch_operands = 0 : i64, tpu.core_type = #tpu.core_type<tc>, window_params = [{transform_indices = @transform_0, window_bounds = array<i64: 1, 8, 16>}, {pipeline_mode = #tpu.pipeline_mode<synchronous>, transform_indices = @transform_1, window_bounds = array<i64: 16, 384>}, {transform_indices = @transform_2, window_bounds = array<i64: 1, 8, 128>}]} {
    %cst = arith.constant 1.600000e+01 : f32
    %0 = math.sqrt %cst : f32
    %cst_0 = arith.constant 1.000000e+00 : f32
    %1 = arith.divf %cst_0, %0 : f32
    %c0 = arith.constant 0 : index
    %c0_1 = arith.constant 0 : index
    %c0_2 = arith.constant 0 : index
    %2 = vector.load %arg1[%c0, %c0_1, %c0_2] : memref<1x8x16xf32, #tpu.memory_space<vmem>>, vector<1x8x16xf32>
    %3 = vector.shape_cast %2 : vector<1x8x16xf32> to vector<8x16xf32>
    %c0_3 = arith.constant 0 : index
    %c0_4 = arith.constant 0 : index
    %4 = vector.load %arg2[%c0_3, %c0_4] : memref<16x384xf32, #tpu.memory_space<vmem>>, vector<16x384xf32>
    %cst_5 = arith.constant dense<0.000000e+00> : vector<8x384xf32>
    %5 = tpu.matmul %3, %4, %cst_5 {dimension_numbers = #tpu.dot_dimension_numbers<[1], [0], [0], [1], [0, 0, 1, 1], [], []>} : vector<8x16xf32>, vector<16x384xf32>, vector<8x384xf32> -> vector<8x384xf32>
    %6 = vector.shape_cast %5 : vector<8x384xf32> to vector<1x8x384xf32>
    %7 = vector.extract_strided_slice %6 {offsets = [0, 0, 0], sizes = [1, 8, 128], strides = [1, 1, 1]} : vector<1x8x384xf32> to vector<1x8x128xf32>
    %8 = vector.extract_strided_slice %6 {offsets = [0, 0, 128], sizes = [1, 8, 128], strides = [1, 1, 1]} : vector<1x8x384xf32> to vector<1x8x128xf32>
    %9 = vector.extract_strided_slice %6 {offsets = [0, 0, 256], sizes = [1, 8, 128], strides = [1, 1, 1]} : vector<1x8x384xf32> to vector<1x8x128xf32>
    "tpu.trace_start"() <{level = 10 : i32, message = "bsd,bse->bde"}> : () -> ()
    %cst_6 = arith.constant dense<0.000000e+00> : vector<1x128x128xf32>
    %10 = tpu.matmul %7, %8, %cst_6 {dimension_numbers = #tpu.dot_dimension_numbers<[1], [1], [2], [2], [0, 0, 0, 2, 1, 2], [0], [0]>} : vector<1x8x128xf32>, vector<1x8x128xf32>, vector<1x128x128xf32> -> vector<1x128x128xf32>
    "tpu.trace_stop"() : () -> ()
    %11 = vector.broadcast %1 : f32 to vector<1x128x128xf32>
    %12 = arith.mulf %10, %11 : vector<1x128x128xf32>
    %13 = tpu.iota {dimensions = array<i32: 2>} : vector<1x128x128xi32>
    %c32_i32 = arith.constant 32 : i32
    %14 = vector.broadcast %c32_i32 : i32 to vector<1x128x128xi32>
    %15 = arith.cmpi slt, %13, %14 : vector<1x128x128xi32>
    %cst_7 = arith.constant -1.000000e+30 : f32
    %16 = vector.broadcast %cst_7 : f32 to vector<1x128x128xf32>
    %17 = arith.select %15, %12, %16 : vector<1x128x128xi1>, vector<1x128x128xf32>
    %cst_8 = arith.constant dense<0xFF800000> : vector<1x128xf32>
    %18 = vector.multi_reduction <maximumf>, %17, %cst_8 [2] : vector<1x128x128xf32> to vector<1x128xf32>
    %19 = vector.shape_cast %18 : vector<1x128xf32> to vector<1x128x1xf32>
    %20 = vector.broadcast %19 : vector<1x128x1xf32> to vector<1x128x128xf32>
    %21 = arith.subf %17, %20 : vector<1x128x128xf32>
    %22 = math.exp %21 : vector<1x128x128xf32>
    %cst_9 = arith.constant dense<0.000000e+00> : vector<1x128xf32>
    %23 = vector.multi_reduction <add>, %22, %cst_9 [2] : vector<1x128x128xf32> to vector<1x128xf32>
    %24 = vector.shape_cast %23 : vector<1x128xf32> to vector<1x128x1xf32>
    %25 = tpu.reciprocal %24 : vector<1x128x1xf32> -> vector<1x128x1xf32>
    %26 = vector.broadcast %25 : vector<1x128x1xf32> to vector<1x128x128xf32>
    %27 = arith.mulf %22, %26 : vector<1x128x128xf32>
    "tpu.trace_start"() <{level = 10 : i32, message = "bsd,bde->bse"}> : () -> ()
    %cst_10 = arith.constant dense<0.000000e+00> : vector<1x8x128xf32>
    %28 = tpu.matmul %9, %27, %cst_10 {dimension_numbers = #tpu.dot_dimension_numbers<[2], [1], [1], [2], [0, 0, 0, 1, 1, 2], [0], [0]>} : vector<1x8x128xf32>, vector<1x128x128xf32>, vector<1x8x128xf32> -> vector<1x8x128xf32>
    "tpu.trace_stop"() : () -> ()
    %c0_11 = arith.constant 0 : index
    %c0_12 = arith.constant 0 : index
    %c0_13 = arith.constant 0 : index
    %29 = vector.load %arg3[%c0_11, %c0_12, %c0_13] : memref<1x8x128xf32, #tpu.memory_space<vmem>>, vector<1x8x128xf32>
    tpu.vector_store %arg3[%c0_11, %c0_12, %c0_13], %28 {strides = array<i32>} : memref<1x8x128xf32, #tpu.memory_space<vmem>>, vector<1x8x128xf32>,
    return
  }
  func.func @transform_0(%arg0: i32) -> (i32, i32, i32) {
    %c0_i32 = arith.constant 0 : i32
    %c0_i32_0 = arith.constant 0 : i32
    %c0_i32_1 = arith.constant 0 : i32
    return %arg0, %c0_i32, %c0_i32_0 : i32, i32, i32
  }
  func.func @transform_1(%arg0: i32) -> (i32, i32) {
    %c0_i32 = arith.constant 0 : i32
    %c0_i32_0 = arith.constant 0 : i32
    %c0_i32_1 = arith.constant 0 : i32
    return %c0_i32, %c0_i32_0 : i32, i32
  }
  func.func @transform_2(%arg0: i32) -> (i32, i32, i32) {
    %c0_i32 = arith.constant 0 : i32
    %c0_i32_0 = arith.constant 0 : i32
    %c0_i32_1 = arith.constant 0 : i32
    return %arg0, %c0_i32, %c0_i32_0 : i32, i32, i32
  }
}

</mosaic_0001>

<bundles_post_ra>
// kernel: tpu_custom_call.1
= control target key start
LH: loop header
LB: loop body
LE: loop exit
PB: predicated region body
PF: predicated region fallthrough
CT: control target
= control target key end

     0   :  { %7 = vsyncpa [#allocation3], 0  ;;  %s1743_s0 = inlined_call_operand.hbm [shape: f32[2,8,16], index: 0, kind: input, shape index: {}]   ;;  %s1744_s1 = inlined_call_operand.hbm [shape: f32[16,384], index: 1, kind: input, shape index: {}]   ;;  %s1745_s2 = inlined_call_operand.hbm [shape: f32[2,8,128], index: 2, kind: output, shape index: {}]  }
   0x1   :  { %9 = vsyncpa [#allocation3 + $0x1], 0 }
   0x2   :  { %10 = vsyncpa [#allocation6], 0 }
   0x3   :  { %11 = vsyncpa [#allocation4], 0 }
   0x4   :  { %13 = vsyncpa [#allocation4 + $0x1], 0  ;;  %s1343_s9 = smov 0   ;;  %s1345_s10 = smov 0  }
   0x5   :  { %s1347_s11 = smov 0   ;;  %s1349_s12 = smov 0  }
   0x6 LB: > { %s1364_s13 = sadd.s32 4294967295, %s1318_s12   ;;  %s896_s14 = sadd.s32 4294967294, %s1318_s12   ;;  %s1318_s12 = sphi %s1349_s12, %s1765_s12   ;;  %s1314_s11 = sphi %s1347_s11, %s1764_s11   ;;  %s1310_s10 = sphi %s1345_s10, %s1763_s10   ;;  %s1306_s9 = sphi %s1343_s9, %s1762_s9  }
   0x7   : > { %p39_p0 = scmp.ne.s32.totalorder %s1310_s10, %s1306_s9  ;;  %p1746_p1 = scmp.eq.s32.totalorder %s1364_s13, 0 }
   0x8   : > { %p90_p3 = scmp.eq.s32.totalorder %s896_s14, 1  ;;  %p897_p5 = scmp.ge.s32.totalorder %s1318_s12, 1 }
   0x9   : > { %p1373_p4 = por %p1746_p1, %p39_p0  ;;  %p97_p7 = scmp.lt.s32.totalorder %s1318_s12, 3 }
   0xa   : > { %p1378_p6 = por %p90_p3, %p39_p0  ;;  %s1320_s18 = smov [#allocation5]  }
   0xb   : > { %s1749_s15 = scalar_select %p1373_p4, 1, 0 }
   0xc   : > { %s1750_s16 = scalar_select %p1378_p6, 1, 0 }
   0xd   : > { %p1383_p8 = pnand %p897_p5, %p97_p7  ;;  %s109_s19 = sshll.u32 %s1320_s18, 4  ;;  %s1387_s19 = int_to_ptr.vmem [resolvable:$true] %s109_s19 }
   0xe   : > { %s1399_s21 = sadd.s32 1, %s1318_s12   ;;  %s26_s22 = sadd.s32 1, %s1314_s11 }
   0xf   : > { %s1751_s17 = scalar_select %p1383_p8, 1, 0 }
  0x10   : > { %p1072_p9 = pneg %p1383_p8  ;;  %s23_s23 = ssub.s32 %s1318_s12, %s1399_s21 }
  0x11   : > { %s1190_s26 = scalar_lea.hbm %s1744_s1, 768 }
  0x12   : > { %p1394_p11 = pnand %p1072_p9, %p1746_p1  ;;  %p1191_p12 = scmp.ne.s32.totalorder %s1744_s1, %s1190_s26 }
  0x13   : > { %p1197_p5 = scmp.lt.u32.totalorder %s1190_s26, %s1744_s1 }
  0x14   : > { %p1192_p13 = pneg %p1394_p11 }
  0x16   : > { %p1193_p0 = pnand %p1192_p13, %p1191_p12 }
  0x18   : > { %p1194_p3 = pneg %p1193_p0 }
  0x1a   : > { %p1199_p7 = pnand %p1197_p5, %p1194_p3 }
  0x1c   : > { %1202 = shalt.err (!%p1199_p7)
}
  0x1d   : > { %s1203_s3 = scalar_lea.vmem %s1387_s19, 768  ;;  %p1211_p2 = scmp.lt.s32.totalorder %s1387_s19, %s1387_s19 }
  0x1e   : > { %p1204_p9 = scmp.ne.s32.totalorder %s1387_s19, %s1203_s3  ;;  %p1212_p6 = scmp.lt.s32.totalorder %s1203_s3, %s1203_s3 }
  0x20   : > { %p1206_p10 = pnand %p1204_p9, %p1192_p13  ;;  %p1213_p4 = por %p1212_p6, %p1211_p2 }
  0x22   : > { %p1207_p1 = pneg %p1206_p10 }
  0x24   : > { %p1214_p8 = pnand %p1213_p4, %p1207_p1 }
  0x26   : > { %1217 = shalt.err (!%p1214_p8)
}
  0x27   : > { %s1321_s4 = smov 384   ;;  %s1322_s5 = smov 24  }
  0x28   : > { %1075 = dma.hbm_to_vmem [thread:$0]  (!%p1394_p11), %s1744_s1, 768, %s1387_s19, [#allocation6], %s1321_s4, %s1321_s4, %s1322_s5  }
  0x29   : > { %p24_p2 = scmp.eq.s32.totalorder %s23_s23, 0  ;;  %p33_p1 = scmp.ne.s32.totalorder %s1314_s11, %s1310_s10 }
  0x2a   : > { %p34_p4 = scmp.eq.s32.totalorder %s1318_s12, 0  ;;  %p1085_p6 = scmp.lt.s32.totalorder %s1318_s12, 2 }
  0x2b   : > { %s1430_s8 = scalar_select %p24_p2, %s1314_s11, %s26_s22  }
  0x2c   : > { %p35_p8 = por %p34_p4, %p33_p1  ;;  %p1753_p10 = scmp.eq.s32.totalorder %s1364_s13, 1 }
  0x2d   : > { %s123_s18 = sand.u32 1, %s1314_s11   ;;  %s901_s24 = sshll.u32 %s1318_s12, 7 }
  0x2e   : > { %p1434_p12 = por %p1753_p10, %p33_p1  ;;  %s900_s25 = sshll.u32 %s123_s18, 3 }
  0x2f   : > { %s1443_s27 = scalar_lea.hbm %s1743_s0, %s901_s24  ;;  %s127_s19 = scalar_lea.vmem [#allocation2], %s900_s25 }
  0x30   : > { %s134_s22 = sshll.u32 %s127_s19, 4  ;;  %p1445_p11 = pnand %p1085_p6, %p35_p8  ;;  %s1449_s22 = int_to_ptr.vmem [resolvable:$true] %s134_s22 }
  0x31   : > { %s124_s28 = scalar_lea.sflag [#allocation3], %s123_s18  ;;  %s1218_s29 = scalar_lea.hbm %s1443_s27, 128 }
  0x32   : > { %p1219_p13 = scmp.ne.s32.totalorder %s1443_s27, %s1218_s29  ;;  %p1220_p0 = pneg %p1445_p11 }
  0x33   : > { %s1223_s4 = scalar_lea.hbm %s1743_s0, 256  ;;  %p1224_p7 = scmp.lt.u32.totalorder %s1443_s27, %s1743_s0 }
  0x34   : > { %p1221_p3 = pnand %p1220_p0, %p1219_p13  ;;  %p1225_p9 = scmp.lt.u32.totalorder %s1223_s4, %s1218_s29 }
  0x35   : > { %p1227_p1 = scmp.lt.u32.totalorder %s1218_s29, %s1443_s27 }
  0x36   : > { %p1222_p5 = pneg %p1221_p3  ;;  %p1226_p2 = por %p1225_p9, %p1224_p7 }
  0x38   : > { %p1228_p4 = por %p1227_p1, %p1226_p2 }
  0x3a   : > { %p1229_p6 = pnand %p1228_p4, %p1222_p5 }
  0x3c   : > { %1232 = shalt.err (!%p1229_p6)
}
  0x3d   : > { %s1233_s7 = scalar_lea.vmem %s1449_s22, 128  ;;  %s1323_s18 = smov [#allocation2]  }
  0x3e   : > { %p1234_p8 = scmp.ne.s32.totalorder %s1449_s22, %s1233_s7  ;;  %s1238_s24 = sshll.u32 %s1323_s18, 4  ;;  %s1239_s24 = int_to_ptr.vmem [resolvable:$false] %s1238_s24 }
  0x3f   : > { %s1240_s25 = scalar_lea.vmem %s1239_s24, 256  ;;  %p1241_p3 = scmp.lt.s32.totalorder %s1449_s22, %s1239_s24 }
  0x40   : > { %p1236_p10 = pnand %p1234_p8, %p1220_p0  ;;  %p1242_p7 = scmp.lt.s32.totalorder %s1240_s25, %s1233_s7 }
  0x42   : > { %p1237_p13 = pneg %p1236_p10  ;;  %p1243_p9 = por %p1242_p7, %p1241_p3 }
  0x44   : > { %p1244_p2 = pnand %p1243_p9, %p1237_p13 }
  0x46   : > { %1247 = shalt.err (!%p1244_p2)
}
  0x47   : > { %1079 = dma.hbm_to_vmem [thread:$0]  (!%p1445_p11), %s1443_s27, 128, %s1449_s22, %s124_s28  }
  0x48   : > { %p1756_p5 = scmp.ne.s32.totalorder %s1751_s17, 0 }
  0x49   : > { %s1479_s20 = sand.u32 (!%p1756_p5), 1, %s1310_s10   ;;  %p1757_p0 = scmp.ne.s32.totalorder (!%p1756_p5), %s1749_s15, 0 }
  0x4a   : > { %143 = sbr.rel (%p1756_p5) target bundleno = 1256 (0x4e8), region = 28  ;;  %s903_s26 = sshll.u32 (!%p1756_p5), %s1479_s20, 3 }
  0x4b   : > { %s146_s19 = scalar_lea.sflag (!%p1756_p5), [#allocation3], %s1479_s20  ;;  %s149_s29 = scalar_lea.vmem (!%p1756_p5), [#allocation2], %s903_s26 }
  0x51   : > { %1293 = dma.done.wait (%p1757_p0), %s146_s19, 128  }
  0x52   : > { %1295 = vsyncadd (%p1757_p0), %s146_s19, 4294967168  ;;  %p1758_p11 = scmp.eq.s32.totalorder %s1364_s13, 0 }
  0x54   : > { %1297 = dma.done.wait (%p1758_p11), [#allocation6], 768   ;;  %p1759_p1 = pmov %p1758_p11 }
  0x55   : > { %v1324_v0 = vmov 0.0   ;;  %v176_v1 = vld [vmem:[#allocation5 + $0x8] sm:$0xff]  ;;  %v179_v2 = vld [vmem:[#allocation5 + $0x20] sm:$0xff]  ;;  %v178_v5 = vld [vmem:[#allocation5 + $0x18] sm:$0xff]  ;;  %vm181_vm0 = vcmask 130048   ;;  %vm358_vm1 = vcmask 64512   ;;  %v568_v26 = vlaneseq }
  0x56   : > { %1299 = vsyncadd (%p1759_p1), [#allocation6], 4294966528  ;;  %249 = vmatprep.mubr.f32.mxu0 %v1324_v0  ;;  %v175_v3 = vld [vmem:[#allocation5] sm:$0xff]  ;;  %v1033_v4 = vpack.c.bf16 %v179_v2, %v176_v1  ;;  %v1494_v7 = vld [vmem:[%s149_s29] sm:$0xff]  ;;  %v1325_v60 = vmov 0.0|0.0   ;;  %vm1326_vm3 = vmmov 0  }
  0x57   : > { %v1035_v6 = vpack.c.bf16 %v178_v5, %v175_v3  ;;  %v1514_v27 = vand.u32 127, %v568_v26  ;;  %v177_v57 = vld [vmem:[#allocation5 + $0x10] sm:$0xff]  ;;  %v180_v58 = vld [vmem:[#allocation5 + $0x28] sm:$0xff]  ;;  %1037 = vmatprep.subr.bf16.mxu1 %v1325_v60  ;;  %969 = vmatprep.mubr.msk.f32.mxu1 %vm1326_vm3, %v1324_v0  ;;  %s173_s15 = scalar_lea.vmem [#allocation7], %s903_s26  ;;  %s925_s27 = sshll.u32 %s1364_s13, 7 }
  0x58   : > { %1034 = vmatprep.subr.bf16.mxu0 %v1033_v4  ;;  %v1038_v59 = vpack.c.bf16 %v180_v58, %v177_v57  ;;  %s816_s17 = sshll.u32 %s173_s15, 4  ;;  %s1701_s28 = scalar_lea.hbm %s1745_s2, %s925_s27  ;;  %s1696_s17 = int_to_ptr.vmem [resolvable:$true] %s816_s17 }
  0x59   : > { %1036 = vmatpush1.bf16.msra.mxu0 %v1035_v6  ;;  %vm570_vm2 = vcmp.lt.s32.totalorder %v1514_v27, 32  ;;  %s803_s30 = scalar_lea.sflag [#allocation4], %s1479_s20  ;;  %s1248_s3 = scalar_lea.vmem %s1696_s17, 128 }
  0x5a   : > { %1039 = vmatpush3.bf16.msra.mxu1 %v1038_v59  ;;  %p1249_p4 = scmp.ne.s32.totalorder %s1696_s17, %s1248_s3  ;;  %s1327_s13 = smov [#allocation7]  }
  0x5b   : > { %1040 = vmatprep.subr.bf16.mxu1 %v1325_v60  ;;  %s1252_s4 = sshll.u32 %s1327_s13, 4  ;;  %s1253_s4 = int_to_ptr.vmem [resolvable:$false] %s1252_s4 }
  0x5c   : > { %906 = vmatmul.mubr.msk.f32.vlgmr.msra.gmra.mrb[0].mxu0 %vm181_vm0, %v1494_v7  ;;  %p1250_p6 = pnand %p1249_p4, %p1434_p12  ;;  %s1254_s5 = scalar_lea.vmem %s1253_s4, 256 }
  0x5d   : > { %970 = vmatmul.mubr.msk.f32.vlgmr.msra.gmra.mrb[0].mxu1 %vm181_vm0, %v1494_v7  ;;  %p1255_p10 = scmp.lt.s32.totalorder %s1696_s17, %s1253_s4  ;;  %p1256_p13 = scmp.lt.s32.totalorder %s1254_s5, %s1248_s3 }
  0x5e   : > { %1030 = vmatprep.mubr.msk.f32.mxu1 %vm1326_vm3, %v1324_v0  ;;  %p1251_p8 = pneg %p1250_p6 }
  0x5f   : > { %p1257_p3 = por %p1256_p13, %p1255_p10 }
  0x61   : > { %p1258_p7 = pnand %p1257_p3, %p1251_p8 }
 0x12f   : > { %v251_v8 = vpop.f32.mrb[0].mxu0 }
 0x130   : > { %326 = vxpose.xlu0.b32.start.end [1/1] (short) %v251_v8, 128  ;;  %v253_v9 = vpop.f32.mrb[1].mxu0 }
 0x131   : > { %972 = vmatprep.subr.mxu0 %v253_v9 }
 0x132   : > { %973 = vmatpush3.msra.mxu0 %v253_v9 }
 0x1b0   : > { %v342_v10 = vpop.trf.xlu0 }
 0x1b1   : > { %974 = vmatprep.mubr.msk.f32.mxu0 %vm358_vm1, %v342_v10 }
 0x1b4   : > { %v343_v11 = vpop.trf.xlu0 }
 0x1b5   : > { %975 = vmatmul.mubr.msk.f32.vlgmr.msra.gmra.mrb[2].mxu0 %vm358_vm1, %v343_v11 }
 0x1b8   : > { %v344_v12 = vpop.trf.xlu0 }
 0x1b9   : > { %977 = vmatprep.mubr.msk.f32.mxu0 %vm358_vm1, %v344_v12 }
 0x1bc   : > { %v345_v13 = vpop.trf.xlu0 }
 0x1bd   : > { %978 = vmatmul.mubr.msk.f32.gmra.mrb[4].mxu0 %vm358_vm1, %v345_v13 }
 0x1c0   : > { %v346_v14 = vpop.trf.xlu0 }
 0x1c1   : > { %980 = vmatprep.mubr.msk.f32.mxu0 %vm358_vm1, %v346_v14 }
 0x1c4   : > { %v347_v15 = vpop.trf.xlu0 }
 0x1c5   : > { %981 = vmatmul.mubr.msk.f32.gmra.mrb[6].mxu0 %vm358_vm1, %v347_v15 }
 0x1c8   : > { %v348_v16 = vpop.trf.xlu0 }
 0x1c9   : > { %983 = vmatprep.mubr.msk.f32.mxu0 %vm358_vm1, %v348_v16 }
 0x1cc   : > { %v349_v17 = vpop.trf.xlu0 }
 0x1cd   : > { %984 = vmatmul.mubr.msk.f32.gmra.mrb[8].mxu0 %vm358_vm1, %v349_v17 }
 0x1d0   : > { %v350_v18 = vpop.trf.xlu0 }
 0x1d1   : > { %986 = vmatprep.mubr.msk.f32.mxu0 %vm358_vm1, %v350_v18 }
 0x1d4   : > { %v351_v19 = vpop.trf.xlu0 }
 0x1d5   : > { %987 = vmatmul.mubr.msk.f32.gmra.mrb[10].mxu0 %vm358_vm1, %v351_v19 }
 0x1d8   : > { %v352_v20 = vpop.trf.xlu0 }
 0x1d9   : > { %989 = vmatprep.mubr.msk.f32.mxu0 %vm358_vm1, %v352_v20 }
 0x1dc   : > { %v353_v21 = vpop.trf.xlu0 }
 0x1dd   : > { %990 = vmatmul.mubr.msk.f32.gmra.mrb[12].mxu0 %vm358_vm1, %v353_v21 }
 0x1e0   : > { %v354_v22 = vpop.trf.xlu0 }
 0x1e1   : > { %992 = vmatprep.mubr.msk.f32.mxu0 %vm358_vm1, %v354_v22 }
 0x1e4   : > { %v355_v23 = vpop.trf.xlu0 }
 0x1e5   : > { %993 = vmatmul.mubr.msk.f32.gmra.mrb[14].mxu0 %vm358_vm1, %v355_v23 }
 0x1e8   : > { %v356_v24 = vpop.trf.xlu0 }
 0x1e9   : > { %995 = vmatprep.mubr.msk.f32.mxu0 %vm358_vm1, %v356_v24 }
 0x1ec   : > { %v357_v25 = vpop.trf.xlu0 }
 0x1ed   : > { %996 = vmatmul.mubr.msk.f32.gmra.mrb[16].mxu0 %vm358_vm1, %v357_v25 }
 0x288   : > { %v976_v28 = vpop.f32.mrb[2].mxu0 }
 0x289   : > { %v553_v29 = vmul.f32 0.25, %v976_v28  ;;  %v473_v30 = vpop.f32.mrb[3].mxu0 }
 0x28a   : > { %v552_v31 = vmul.f32 0.25, %v473_v30 }
 0x28b   : > { %v1519_v32 = vsel %vm570_vm2, %v553_v29, -1e+30 }
 0x28c   : > { %589 = vmax.xlane.f32.xlu1 %v1519_v32  ;;  %v1524_v33 = vsel %vm570_vm2, %v552_v31, -1e+30 }
 0x28d   : > { %587 = vmax.xlane.f32.xlu0 %v1524_v33 }
 0x290   : > { %v979_v34 = vpop.f32.mrb[4].mxu0 }
 0x291   : > { %v555_v35 = vmul.f32 0.25, %v979_v34  ;;  %v483_v36 = vpop.f32.mrb[5].mxu0 }
 0x292   : > { %v554_v37 = vmul.f32 0.25, %v483_v36 }
 0x293   : > { %v1529_v38 = vsel %vm570_vm2, %v555_v35, -1e+30 }
 0x294   : > { %593 = vmax.xlane.f32.xlu1 %v1529_v38  ;;  %v1534_v39 = vsel %vm570_vm2, %v554_v37, -1e+30 }
 0x298   : > { %591 = vmax.xlane.f32.xlu1 %v1534_v39  ;;  %v982_v40 = vpop.f32.mrb[6].mxu0 }
 0x299   : > { %v557_v41 = vmul.f32 0.25, %v982_v40  ;;  %v493_v42 = vpop.f32.mrb[7].mxu0 }
 0x29a   : > { %v556_v43 = vmul.f32 0.25, %v493_v42 }
 0x29b   : > { %v1539_v44 = vsel %vm570_vm2, %v557_v41, -1e+30 }
 0x29c   : > { %597 = vmax.xlane.f32.xlu1 %v1539_v44  ;;  %v1544_v45 = vsel %vm570_vm2, %v556_v43, -1e+30 }
 0x2a0   : > { %595 = vmax.xlane.f32.xlu1 %v1544_v45  ;;  %v985_v46 = vpop.f32.mrb[8].mxu0 }
 0x2a1   : > { %v559_v47 = vmul.f32 0.25, %v985_v46  ;;  %v503_v48 = vpop.f32.mrb[9].mxu0 }
 0x2a2   : > { %v558_v49 = vmul.f32 0.25, %v503_v48 }
 0x2a3   : > { %v1549_v50 = vsel %vm570_vm2, %v559_v47, -1e+30 }
 0x2a4   : > { %601 = vmax.xlane.f32.xlu1 %v1549_v50  ;;  %v1554_v51 = vsel %vm570_vm2, %v558_v49, -1e+30 }
 0x2a8   : > { %599 = vmax.xlane.f32.xlu1 %v1554_v51  ;;  %v988_v52 = vpop.f32.mrb[10].mxu0 }
 0x2a9   : > { %v561_v53 = vmul.f32 0.25, %v988_v52  ;;  %v513_v54 = vpop.f32.mrb[11].mxu0 }
 0x2aa   : > { %v560_v55 = vmul.f32 0.25, %v513_v54 }
 0x2ab   : > { %v1559_v56 = vsel %vm570_vm2, %v561_v53, -1e+30 }
 0x2ac   : > { %605 = vmax.xlane.f32.xlu1 %v1559_v56  ;;  %v1565_v61 = vsel %vm570_vm2, %v560_v55, -1e+30 }
 0x2b0   : > { %603 = vmax.xlane.f32.xlu1 %v1565_v61  ;;  %v991_v62 = vpop.f32.mrb[12].mxu0 }
 0x2b1   : > { %v563_v63 = vmul.f32 0.25, %v991_v62  ;;  %v523_v1 = vpop.f32.mrb[13].mxu0 }
 0x2b2   : > { %v562_v2 = vmul.f32 0.25, %v523_v1 }
 0x2b3   : > { %v1575_v3 = vsel %vm570_vm2, %v563_v63, -1e+30 }
 0x2b4   : > { %609 = vmax.xlane.f32.xlu1 %v1575_v3  ;;  %v1580_v4 = vsel %vm570_vm2, %v562_v2, -1e+30 }
 0x2b8   : > { %607 = vmax.xlane.f32.xlu1 %v1580_v4  ;;  %v994_v5 = vpop.f32.mrb[14].mxu0 }
 0x2b9   : > { %v565_v6 = vmul.f32 0.25, %v994_v5  ;;  %v533_v8 = vpop.f32.mrb[15].mxu0 }
 0x2ba   : > { %v564_v9 = vmul.f32 0.25, %v533_v8 }
 0x2bb   : > { %v1585_v0 = vsel %vm570_vm2, %v565_v6, -1e+30 }
 0x2bc   : > { %613 = vmax.xlane.f32.xlu1 %v1585_v0  ;;  %v1590_v7 = vsel %vm570_vm2, %v564_v9, -1e+30 }
 0x2c0   : > { %611 = vmax.xlane.f32.xlu1 %v1590_v7  ;;  %v997_v10 = vpop.f32.mrb[16].mxu0 }
 0x2c1   : > { %v543_v11 = vpop.f32.mrb[17].mxu0  ;;  %v567_v13 = vmul.f32 0.25, %v997_v10 }
 0x2c2   : > { %v566_v12 = vmul.f32 0.25, %v543_v11 }
 0x2c3   : > { %v1600_v15 = vsel %vm570_vm2, %v567_v13, -1e+30 }
 0x2c4   : > { %v1595_v14 = vsel %vm570_vm2, %v566_v12, -1e+30 }
 0x2c5   : > { %615 = vmax.xlane.f32.xlu1 %v1595_v14 }
 0x2c9   : > { %617 = vmax.xlane.f32.xlu1 %v1600_v15 }
 0x319   : > { %v590_v16 = vpop.xlane.xlu1 %589 }
 0x31a   : > { %v620_v17 = vsub.f32 %v1519_v32, %v590_v16  ;;  %v588_v18 = vpop.xlane.xlu0 %587 }
 0x31b   : > { %v619_v19 = vsub.f32 %v1524_v33, %v588_v18  ;;  %v1667_v18 = vpop.f32.mrb[0].mxu1 }
 0x31c   : > { %v637_v20 = vmul.f32 1.442695, %v620_v17 }
 0x31d   : > { %v635_v21 = vmul.f32 1.442695, %v619_v19 }
 0x31e   : > { %1126 = vpow2.f32 %v637_v20 }
 0x31f   : > { %1128 = vpow2.f32 %v635_v21 }
 0x321   : > { %v594_v22 = vpop.xlane.xlu1 %593 }
 0x322   : > { %v622_v23 = vsub.f32 %v1529_v38, %v594_v22 }
 0x324   : > { %v641_v24 = vmul.f32 1.442695, %v622_v23 }
 0x325   : > { %v592_v25 = vpop.xlane.xlu1 %591 }
 0x326   : > { %1130 = vpow2.f32 %v641_v24  ;;  %v621_v26 = vsub.f32 %v1534_v39, %v592_v25 }
 0x328   : > { %v1607_v27 = vpop.eup %1126  ;;  %v639_v28 = vmul.f32 1.442695, %v621_v26 }
 0x329   : > { %v598_v29 = vpop.xlane.xlu1 %597  ;;  %669 = vadd.xlane.f32.xlu1 %v1607_v27  ;;  %v1611_v31 = vpop.eup %1128 }
 0x32a   : > { %1132 = vpow2.f32 %v639_v28  ;;  %v624_v30 = vsub.f32 %v1539_v44, %v598_v29 }
 0x32c   : > { %v645_v32 = vmul.f32 1.442695, %v624_v30 }
 0x32d   : > { %v596_v33 = vpop.xlane.xlu1 %595  ;;  %667 = vadd.xlane.f32.xlu1 %v1611_v31 }
 0x32e   : > { %1134 = vpow2.f32 %v645_v32  ;;  %v623_v34 = vsub.f32 %v1544_v45, %v596_v33 }
 0x330   : > { %v1615_v35 = vpop.eup %1130  ;;  %v643_v36 = vmul.f32 1.442695, %v623_v34 }
 0x331   : > { %v602_v37 = vpop.xlane.xlu1 %601  ;;  %673 = vadd.xlane.f32.xlu1 %v1615_v35 }
 0x332   : > { %1136 = vpow2.f32 %v643_v36  ;;  %v626_v38 = vsub.f32 %v1549_v50, %v602_v37 }
 0x334   : > { %v1619_v39 = vpop.eup %1132  ;;  %v649_v40 = vmul.f32 1.442695, %v626_v38 }
 0x335   : > { %v600_v41 = vpop.xlane.xlu1 %599  ;;  %671 = vadd.xlane.f32.xlu1 %v1619_v39 }
 0x336   : > { %1138 = vpow2.f32 %v649_v40  ;;  %v625_v42 = vsub.f32 %v1554_v51, %v600_v41 }
 0x338   : > { %v1623_v43 = vpop.eup %1134  ;;  %v647_v44 = vmul.f32 1.442695, %v625_v42 }
 0x339   : > { %v606_v45 = vpop.xlane.xlu1 %605  ;;  %677 = vadd.xlane.f32.xlu1 %v1623_v43 }
 0x33a   : > { %1140 = vpow2.f32 %v647_v44  ;;  %v628_v46 = vsub.f32 %v1559_v56, %v606_v45 }
 0x33c   : > { %v1627_v47 = vpop.eup %1136  ;;  %v653_v48 = vmul.f32 1.442695, %v628_v46 }
 0x33d   : > { %v604_v49 = vpop.xlane.xlu1 %603  ;;  %675 = vadd.xlane.f32.xlu1 %v1627_v47 }
 0x33e   : > { %1142 = vpow2.f32 %v653_v48  ;;  %v627_v50 = vsub.f32 %v1565_v61, %v604_v49 }
 0x340   : > { %v1631_v52 = vpop.eup %1138  ;;  %v651_v51 = vmul.f32 1.442695, %v627_v50 }
 0x341   : > { %v610_v53 = vpop.xlane.xlu1 %609  ;;  %681 = vadd.xlane.f32.xlu1 %v1631_v52 }
 0x342   : > { %1144 = vpow2.f32 %v651_v51  ;;  %v630_v54 = vsub.f32 %v1575_v3, %v610_v53 }
 0x344   : > { %v1635_v55 = vpop.eup %1140  ;;  %v657_v56 = vmul.f32 1.442695, %v630_v54 }
 0x345   : > { %v608_v57 = vpop.xlane.xlu1 %607  ;;  %679 = vadd.xlane.f32.xlu1 %v1635_v55 }
 0x346   : > { %1146 = vpow2.f32 %v657_v56  ;;  %v629_v58 = vsub.f32 %v1580_v4, %v608_v57 }
 0x348   : > { %v1639_v59 = vpop.eup %1142  ;;  %v655_v61 = vmul.f32 1.442695, %v629_v58 }
 0x349   : > { %v614_v62 = vpop.xlane.xlu1 %613  ;;  %685 = vadd.xlane.f32.xlu1 %v1639_v59 }
 0x34a   : > { %1148 = vpow2.f32 %v655_v61  ;;  %v632_v63 = vsub.f32 %v1585_v0, %v614_v62 }
 0x34c   : > { %v1643_v1 = vpop.eup %1144  ;;  %v661_v2 = vmul.f32 1.442695, %v632_v63 }
 0x34d   : > { %v612_v3 = vpop.xlane.xlu1 %611  ;;  %683 = vadd.xlane.f32.xlu1 %v1643_v1 }
 0x34e   : > { %1150 = vpow2.f32 %v661_v2  ;;  %v631_v5 = vsub.f32 %v1590_v7, %v612_v3 }
 0x350   : > { %v1647_v6 = vpop.eup %1146  ;;  %v659_v4 = vmul.f32 1.442695, %v631_v5 }
 0x351   : > { %689 = vadd.xlane.f32.xlu1 %v1647_v6 }
 0x352   : > { %1152 = vpow2.f32 %v659_v4  ;;  %v616_v8 = vpop.xlane.xlu1 %615 }
 0x353   : > { %v633_v9 = vsub.f32 %v1595_v14, %v616_v8 }
 0x354   : > { %v1651_v10 = vpop.eup %1148 }
 0x355   : > { %v663_v0 = vmul.f32 1.442695, %v633_v9  ;;  %687 = vadd.xlane.f32.xlu1 %v1651_v10 }
 0x356   : > { %v618_v11 = vpop.xlane.xlu1 %617 }
 0x357   : > { %1154 = vpow2.f32 %v663_v0  ;;  %v634_v12 = vsub.f32 %v1600_v15, %v618_v11  ;;  %v971_v15 = vpop.f32.mrb[1].mxu1 }
 0x358   : > { %v1655_v13 = vpop.eup %1150 }
 0x359   : > { %v665_v7 = vmul.f32 1.442695, %v634_v12  ;;  %693 = vadd.xlane.f32.xlu0 %v1655_v13 }
 0x35b   : > { %1156 = vpow2.f32 %v665_v7 }
 0x35c   : > { %v1658_v16 = vpop.eup %1152 }
 0x35d   : > { %691 = vadd.xlane.f32.xlu1 %v1658_v16 }
 0x361   : > { %v1661_v14 = vpop.eup %1154 }
 0x362   : > { %695 = vadd.xlane.f32.xlu1 %v1661_v14 }
 0x365   : > { %v1664_v17 = vpop.eup %1156 }
 0x366   : > { %697 = vadd.xlane.f32.xlu0 %v1664_v17 }
 0x3b6   : > { %v670_v19 = vpop.xlane.xlu1 %669 }
 0x3b7   : > { %1158 = vrcp.f32 %v670_v19 }
 0x3ba   : > { %v668_v20 = vpop.xlane.xlu1 %667 }
 0x3bb   : > { %1160 = vrcp.f32 %v668_v20 }
 0x3be   : > { %v674_v21 = vpop.xlane.xlu1 %673 }
 0x3bf   : > { %1162 = vrcp.f32 %v674_v21 }
 0x3c1   : > { %v1159_v23 = vpop.eup %1158 }
 0x3c2   : > { %v672_v22 = vpop.xlane.xlu1 %671  ;;  %v716_v28 = vmul.f32 %v1159_v23, %v1607_v27 }
 0x3c3   : > { %1164 = vrcp.f32 %v672_v22 }
 0x3c5   : > { %v1161_v24 = vpop.eup %1160 }
 0x3c6   : > { %v678_v25 = vpop.xlane.xlu1 %677  ;;  %v715_v26 = vmul.f32 %v1161_v24, %v1611_v31 }
 0x3c7   : > { %1166 = vrcp.f32 %v678_v25 }
 0x3c8   : > { %v1041_v29 = vpack.c.bf16 %v716_v28, %v715_v26 }
 0x3c9   : > { %v1163_v32 = vpop.eup %1162 }
 0x3ca   : > { %1042 = vmatpush3.bf16.msra.mxu1 %v1041_v29  ;;  %v676_v30 = vpop.xlane.xlu1 %675  ;;  %v718_v37 = vmul.f32 %v1163_v32, %v1615_v35 }
 0x3cb   : > { %1168 = vrcp.f32 %v676_v30  ;;  %1043 = vmatprep.subr.bf16.mxu1 %v1325_v60 }
 0x3cd   : > { %v1165_v33 = vpop.eup %1164 }
 0x3ce   : > { %v682_v34 = vpop.xlane.xlu1 %681  ;;  %v717_v36 = vmul.f32 %v1165_v33, %v1619_v39 }
 0x3cf   : > { %1170 = vrcp.f32 %v682_v34 }
 0x3d0   : > { %v1044_v38 = vpack.c.bf16 %v718_v37, %v717_v36 }
 0x3d1   : > { %v1167_v40 = vpop.eup %1166 }
 0x3d2   : > { %1045 = vmatpush3.bf16.msra.mxu1 %v1044_v38  ;;  %v680_v31 = vpop.xlane.xlu1 %679  ;;  %v720_v44 = vmul.f32 %v1167_v40, %v1623_v43 }
 0x3d3   : > { %1172 = vrcp.f32 %v680_v31  ;;  %1046 = vmatprep.subr.bf16.mxu1 %v1325_v60 }
 0x3d5   : > { %v1169_v27 = vpop.eup %1168 }
 0x3d6   : > { %v686_v41 = vpop.xlane.xlu1 %685  ;;  %v719_v42 = vmul.f32 %v1169_v27, %v1627_v47 }
 0x3d7   : > { %1174 = vrcp.f32 %v686_v41 }
 0x3d8   : > { %v1047_v45 = vpack.c.bf16 %v720_v44, %v719_v42 }
 0x3d9   : > { %v1171_v46 = vpop.eup %1170 }
 0x3da   : > { %1048 = vmatpush3.bf16.msra.mxu1 %v1047_v45  ;;  %v684_v39 = vpop.xlane.xlu1 %683  ;;  %v722_v50 = vmul.f32 %v1171_v46, %v1631_v52 }
 0x3db   : > { %1176 = vrcp.f32 %v684_v39  ;;  %1049 = vmatprep.subr.bf16.mxu1 %v1325_v60 }
 0x3dd   : > { %v1173_v35 = vpop.eup %1172 }
 0x3de   : > { %v690_v48 = vpop.xlane.xlu1 %689  ;;  %v721_v49 = vmul.f32 %v1173_v35, %v1635_v55 }
 0x3df   : > { %1178 = vrcp.f32 %v690_v48 }
 0x3e0   : > { %v1050_v51 = vpack.c.bf16 %v722_v50, %v721_v49 }
 0x3e1   : > { %v1175_v53 = vpop.eup %1174 }
 0x3e2   : > { %1051 = vmatpush3.bf16.msra.mxu1 %v1050_v51  ;;  %v688_v47 = vpop.xlane.xlu1 %687  ;;  %v724_v57 = vmul.f32 %v1175_v53, %v1639_v59 }
 0x3e3   : > { %1180 = vrcp.f32 %v688_v47  ;;  %1052 = vmatprep.subr.bf16.mxu1 %v1325_v60 }
 0x3e5   : > { %v1177_v43 = vpop.eup %1176 }
 0x3e6   : > { %v694_v54 = vpop.xlane.xlu0 %693  ;;  %v723_v56 = vmul.f32 %v1177_v43, %v1643_v1 }
 0x3e7   : > { %1182 = vrcp.f32 %v694_v54 }
 0x3e8   : > { %v1053_v58 = vpack.c.bf16 %v724_v57, %v723_v56 }
 0x3e9   : > { %v1179_v61 = vpop.eup %1178 }
 0x3ea   : > { %1054 = vmatpush3.bf16.msra.mxu1 %v1053_v58  ;;  %v692_v55 = vpop.xlane.xlu1 %691  ;;  %v726_v63 = vmul.f32 %v1179_v61, %v1647_v6 }
 0x3eb   : > { %1184 = vrcp.f32 %v692_v55  ;;  %1055 = vmatprep.subr.bf16.mxu1 %v1325_v60 }
 0x3ed   : > { %v1181_v52 = vpop.eup %1180 }
 0x3ee   : > { %v725_v62 = vmul.f32 %v1181_v52, %v1651_v10 }
 0x3ef   : > { %v696_v2 = vpop.xlane.xlu1 %695 }
 0x3f0   : > { %v1056_v3 = vpack.c.bf16 %v726_v63, %v725_v62  ;;  %1186 = vrcp.f32 %v696_v2 }
 0x3f1   : > { %v1183_v1 = vpop.eup %1182 }
 0x3f2   : > { %1057 = vmatpush3.bf16.msra.mxu1 %v1056_v3  ;;  %v728_v8 = vmul.f32 %v1183_v1, %v1655_v13 }
 0x3f3   : > { %v698_v5 = vpop.xlane.xlu0 %697  ;;  %1058 = vmatprep.subr.bf16.mxu1 %v1325_v60 }
 0x3f4   : > { %1188 = vrcp.f32 %v698_v5 }
 0x3f5   : > { %v1185_v59 = vpop.eup %1184 }
 0x3f6   : > { %v727_v4 = vmul.f32 %v1185_v59, %v1658_v16 }
 0x3f8   : > { %v1059_v9 = vpack.c.bf16 %v728_v8, %v727_v4 }
 0x3fa   : > { %1060 = vmatpush3.bf16.msra.mxu1 %v1059_v9  ;;  %v1187_v6 = vpop.eup %1186 }
 0x3fb   : > { %1061 = vmatprep.subr.bf16.mxu1 %v1325_v60  ;;  %v729_v0 = vmul.f32 %v1187_v6, %v1661_v14 }
 0x3fe   : > { %v1189_v10 = vpop.eup %1188 }
 0x3ff   : > { %v730_v11 = vmul.f32 %v1189_v10, %v1664_v17 }
 0x401   : > { %v1062_v12 = vpack.c.bf16 %v730_v11, %v729_v0 }
 0x403   : > { %1063 = vmatpush3.bf16.msra.mxu1 %v1062_v12 }
 0x406   : > { %1031 = vmatmul.mubr.f32.vlgmr.msra.gmra.mrb[2].mxu1 %v1667_v18 }
 0x4d9   : > { %v797_v60 = vpop.f32.mrb[2].mxu1 }
 0x4da   : > { %801 = vst [vmem:[%s173_s15] sm:$0xff] %v797_v60  ;;  %v1032_v13 = vpop.f32.mrb[3].mxu1 }
 0x4db   : > { %1261 = shalt.err (!%p1258_p7)
}
 0x4dc   : > { %s1262_s6 = scalar_lea.hbm %s1701_s28, 128  ;;  %s1266_s24 = scalar_lea.hbm %s1745_s2, 256 }
 0x4dd   : > { %p1263_p9 = scmp.ne.s32.totalorder %s1701_s28, %s1262_s6  ;;  %p1267_p0 = scmp.lt.u32.totalorder %s1701_s28, %s1745_s2 }
 0x4de   : > { %p1268_p11 = scmp.lt.u32.totalorder %s1266_s24, %s1262_s6  ;;  %p1270_p4 = scmp.lt.u32.totalorder %s1262_s6, %s1701_s28 }
 0x4df   : > { %p1264_p2 = pnand %p1263_p9, %p1434_p12 }
 0x4e0   : > { %p1269_p1 = por %p1268_p11, %p1267_p0 }
 0x4e1   : > { %p1265_p5 = pneg %p1264_p2 }
 0x4e2   : > { %p1271_p6 = por %p1270_p4, %p1269_p1 }
 0x4e4   : > { %p1272_p8 = pnand %p1271_p6, %p1265_p5 }
 0x4e6   : > { %1275 = shalt.err (!%p1272_p8)
}
 0x4e7   : > { %1070 = dma.vmem_to_hbm [thread:$0]  (%p1434_p12), %s1696_s17, 128, %s1701_s28, %s803_s30  }
 0x4e8 PF: > { %s828_s26 = sand.u32 1, %s1306_s9   ;;  %p1760_p10 = scmp.ne.s32.totalorder %s1750_s16, 0 }
 0x4e9   : > { %p1761_p13 = scmp.ge.s32.totalorder %s1318_s12, 2  ;;  %s829_s19 = scalar_lea.sflag [#allocation4], %s828_s26 }
 0x4eb   : > { %p1081_p3 = pnand %p1761_p13, %p1760_p10 }
 0x4ed   : > { %1301 = dma.done.wait (!%p1081_p3), %s829_s19, 128  }
 0x4ee   : > { %1303 = vsyncadd (!%p1081_p3), %s829_s19, 4294967168  ;;  %p16_p7 = scmp.ge.s32.totalorder %s1399_s21, 4   ;;  %s1762_s9 = smov %s1310_s10 }
 0x4ef   : > { %s1763_s10 = smov %s1314_s11  ;;  %s1764_s11 = smov %s1430_s8 }
 0x4f0   : > { %s1765_s12 = smov %s1399_s21  ;;  %18 = sbr.rel (!%p16_p7) target bundleno = 6 (0x6), region = 77 }
 0x4f7   :  { %834 = vsyncpa [#allocation3], 1 }
 0x4f8   :  { %836 = vsyncpa [#allocation3 + $0x1], 1 }
 0x4f9   :  { %837 = vsyncpa [#allocation6], 1 }
 0x4fa   :  { %838 = vsyncpa [#allocation4], 1 }
 0x4fb   :  { %840 = vsyncpa [#allocation4 + $0x1], 1 }

</bundles_post_ra>
